<compile_context>
chip_gen: v7x
topology: tpu7x:2x2x1
jax: 0.10.0
libtpu: 0.0.40
codegen_flags: <defaults>
</compile_context>

<pallas_src>
import jax
import jax.numpy as jnp
from jax import lax
from jax.experimental import pallas as pl
from jax.experimental.pallas import tpu as pltpu

INPUT_SIZE = 10
OUTPUT_SIZE = 5

# Largest batch handled by the single-invocation (no-grid) path.  Whole
# padded x/y residents are ~9 MiB at 8192, under every generation's default
# scoped-VMEM budget, and masked-store count (B/8) is still noise vs launch
# overhead.
SMALL_BATCH_MAX = 8192

# Batch (lane) tile for the tiled path.  The untransposed (TB, 10) f32 input
# block lane-pads 10->128, i.e. TB*512 B per buffer; double-buffered x + the
# lane-dense (8, TB) output tiles total ~17 MiB at TB=16384, which we budget
# for explicitly via vmem_limit_bytes below.
BATCH_TILE = 16384

# Scoped-VMEM budget for the tiled path: covers the ~17 MiB working set with
# headroom, clears v5e's 16 MiB default, and stays well inside v7x's 64 MiB
# physical VMEM per TensorCore.
_TILED_VMEM_LIMIT = 48 * 1024 * 1024


def _cost(batch):
    return pl.CostEstimate(
        flops=2 * batch * INPUT_SIZE * OUTPUT_SIZE,
        transcendentals=0,
        bytes_accessed=4 * (batch * (INPUT_SIZE + OUTPUT_SIZE)
                            + INPUT_SIZE * OUTPUT_SIZE + OUTPUT_SIZE),
    )


def _linear_rowmajor_kernel(x_ref, w_ref, b_ref, y_ref):
    """Small-batch kernel: (B, in) @ (out, in)^T + b -> (B, out), one shot."""
    acc = lax.dot_general(
        x_ref[...], w_ref[...],
        dimension_numbers=(((1,), (1,)), ((), ())),   # contract the `in` dims
        preferred_element_type=jnp.float32)
    y_ref[...] = (acc + b_ref[...]).astype(y_ref.dtype)   # b_ref: (1, out)


def _linear_lane_dense_kernel(x_ref, w_ref, b_ref, yt_ref):
    """Tiled kernel: x block (TB, in) row-major in, lane-dense (out, TB) out.

    y^T = W @ x^T computed as dot_general(W, x) contracting the minor `in`
    dim of both operands; the MXU consumes this orientation natively so no
    explicit in-kernel transpose of the (TB, in) tile is materialized.
    """
    acc = lax.dot_general(
        w_ref[...], x_ref[...],
        dimension_numbers=(((1,), (1,)), ((), ())),   # (out,in) x (TB,in) -> (out,TB)
        preferred_element_type=jnp.float32)
    yt_ref[...] = (acc + b_ref[...]).astype(yt_ref.dtype)  # b_ref: (out, 1)


def small_model_forward_lane_major(x, w, b):
    """y^T = W @ x^T + b, returned LANE-MAJOR as (out_features, B).

    Use this variant when the consumer can accept (features, batch) layout —
    it has zero wrapper-side transposes (minimum possible HBM traffic).
    x: (B, in) f32, w: (out, in) f32 (nn.Linear layout), b: (out,) f32.
    """
    batch = x.shape[0]
    b_col = b.reshape(OUTPUT_SIZE, 1)
    grid = (pl.cdiv(batch, BATCH_TILE),)
    # Ragged last tile is safe: the contraction runs over the fully-present
    # `in` dim, each output lane depends only on its own input row, and
    # out-of-bounds output lanes are never written back.
    return pl.pallas_call(
        _linear_lane_dense_kernel,
        out_shape=jax.ShapeDtypeStruct((OUTPUT_SIZE, batch), jnp.float32),
        grid=grid,
        in_specs=[
            # Row-major x tile; HBM read is contiguous TB*40 B.
            # TODO(synk): optionally sweep pipeline_mode=pl.Buffered(3) here
            # on v5e once profiled; default double-buffering already hides
            # the ~0.7 us per-step DMA behind compute.
            pl.BlockSpec((BATCH_TILE, INPUT_SIZE), lambda i: (i, 0)),
            pl.BlockSpec((OUTPUT_SIZE, INPUT_SIZE), lambda i: (0, 0)),
            pl.BlockSpec((OUTPUT_SIZE, 1), lambda i: (0, 0)),
        ],
        out_specs=pl.BlockSpec((OUTPUT_SIZE, BATCH_TILE), lambda i: (0, i)),
        compiler_params=pltpu.CompilerParams(
            # TODO(synk): verify in xprof that both v7x TensorCores are busy;
            # if only one TC issues DMAs, switch to pltpu.CORE_PARALLEL.
            dimension_semantics=("parallel",),
            vmem_limit_bytes=_TILED_VMEM_LIMIT,
        ),
        cost_estimate=_cost(batch),
    )(x, w, b_col)


def small_model_forward(x, w, b):
    """Forward pass of SmallModel (y = x @ W^T + b), result shape (B, out).

    x: (B, in_features) f32
    w: (out_features, in_features) f32  (PyTorch nn.Linear layout)
    b: (out_features,) f32
    """
    batch = x.shape[0]

    if batch <= SMALL_BATCH_MAX:
        # Overhead-bound regime: one fused pallas_call, no grid, no transpose
        # HLOs anywhere.  (For B of a few hundred or less plain jnp.dot would
        # be equivalent; we keep the Pallas path for a single code surface.)
        return pl.pallas_call(
            _linear_rowmajor_kernel,
            out_shape=jax.ShapeDtypeStruct((batch, OUTPUT_SIZE), jnp.float32),
            in_specs=[
                pl.BlockSpec(memory_space=pltpu.MemorySpace.VMEM),
                pl.BlockSpec(memory_space=pltpu.MemorySpace.VMEM),
                pl.BlockSpec(memory_space=pltpu.MemorySpace.VMEM),
            ],
            out_specs=pl.BlockSpec(memory_space=pltpu.MemorySpace.VMEM),
            cost_estimate=_cost(batch),
        )(x, w, b.reshape(1, OUTPUT_SIZE))

    # Large batch: lane-dense tiled kernel, then one (out, B) -> (B, out)
    # transpose to satisfy the nn.Linear output contract.  Emitting (B, 5)
    # blocks directly would instead bind on ~TB/8 masked 5-lane stores per
    # tile, which costs more than this 20 B/sample-each-way relayout.
    yt = small_model_forward_lane_major(x, w, b)
    return yt.T


if __name__ == "__main__":
    key = jax.random.PRNGKey(0)
    kx, kw, kb = jax.random.split(key, 3)

    # Deterministic params (mimics nn.Linear's uniform(-1/sqrt(in), 1/sqrt(in))).
    bound = 1.0 / (INPUT_SIZE ** 0.5)
    w = jax.random.uniform(kw, (OUTPUT_SIZE, INPUT_SIZE), jnp.float32, -bound, bound)
    b = jax.random.uniform(kb, (OUTPUT_SIZE,), jnp.float32, -bound, bound)

    # Small-batch (single-call, no-grid) path at the module's natural size.
    batch = 8
    x = jax.random.normal(kx, (batch, INPUT_SIZE), jnp.float32)
    y = jax.block_until_ready(small_model_forward(x, w, b))
    y_ref = x @ w.T + b
    assert y.shape == (batch, OUTPUT_SIZE)
    assert jnp.allclose(y, y_ref, atol=1e-4, rtol=1e-4)

    # Exercise the tiled, batch-parallel path, including a ragged last tile.
    big_batch = BATCH_TILE + 4096
    xb = jax.random.normal(kx, (big_batch, INPUT_SIZE), jnp.float32)
    yb = jax.block_until_ready(small_model_forward(xb, w, b))
    yb_ref = xb @ w.T + b
    assert yb.shape == (big_batch, OUTPUT_SIZE)
    assert jnp.allclose(yb, yb_ref, atol=1e-4, rtol=1e-4)

    # Lane-major variant (no transposes at all) agrees as well.
    ybt = jax.block_until_ready(small_model_forward_lane_major(xb, w, b))
    assert ybt.shape == (OUTPUT_SIZE, big_batch)
    assert jnp.allclose(ybt.T, yb_ref, atol=1e-4, rtol=1e-4)

    print("KERNEL_OK")
</pallas_src>

<mosaic_0001>
module attributes {stable_mosaic.version = 11 : i64} {
  func.func @_linear_rowmajor_kernel(%arg0: memref<8x10xf32, #tpu.memory_space<vmem>>, %arg1: memref<5x10xf32, #tpu.memory_space<vmem>>, %arg2: memref<1x5xf32, #tpu.memory_space<vmem>>, %arg3: memref<8x5xf32, #tpu.memory_space<vmem>>) attributes {dimension_semantics = [], scalar_prefetch = 0 : i64, scratch_operands = 0 : i64, tpu.core_type = #tpu.core_type<tc>} {
    %c0 = arith.constant 0 : index
    %c0_0 = arith.constant 0 : index
    %0 = vector.load %arg0[%c0, %c0_0] : memref<8x10xf32, #tpu.memory_space<vmem>>, vector<8x10xf32>
    %c0_1 = arith.constant 0 : index
    %c0_2 = arith.constant 0 : index
    %1 = vector.load %arg1[%c0_1, %c0_2] : memref<5x10xf32, #tpu.memory_space<vmem>>, vector<5x10xf32>
    %cst = arith.constant dense<0.000000e+00> : vector<8x5xf32>
    %2 = tpu.matmul %0, %1, %cst {dimension_numbers = #tpu.dot_dimension_numbers<[1], [1], [0], [0], [0, 0, 1, 0], [], []>} : vector<8x10xf32>, vector<5x10xf32>, vector<8x5xf32> -> vector<8x5xf32>
    %c0_3 = arith.constant 0 : index
    %c0_4 = arith.constant 0 : index
    %3 = vector.load %arg2[%c0_3, %c0_4] : memref<1x5xf32, #tpu.memory_space<vmem>>, vector<1x5xf32>
    %4 = vector.broadcast %3 : vector<1x5xf32> to vector<8x5xf32>
    %5 = arith.addf %2, %4 : vector<8x5xf32>
    %c0_5 = arith.constant 0 : index
    %c0_6 = arith.constant 0 : index
    %6 = vector.load %arg3[%c0_5, %c0_6] : memref<8x5xf32, #tpu.memory_space<vmem>>, vector<8x5xf32>
    tpu.vector_store %arg3[%c0_5, %c0_6], %5 {strides = array<i32>} : memref<8x5xf32, #tpu.memory_space<vmem>>, vector<8x5xf32>,
    return
  }
}

</mosaic_0001>

<bundles_post_ra>
// kernel: tpu_custom_call.1
= control target key start
LH: loop header
LB: loop body
LE: loop exit
PB: predicated region body
PF: predicated region fallthrough
CT: control target
= control target key end

     0   :  { %8 = vsyncpa [#allocation3], 0  ;;  %s294_s0 = inlined_call_operand.hbm [shape: f32[8,10], index: 0, kind: input, shape index: {}]   ;;  %s295_s1 = inlined_call_operand.hbm [shape: f32[5,10], index: 1, kind: input, shape index: {}]   ;;  %s296_s2 = inlined_call_operand.vmem [shape: f32[1,5], index: 2, kind: input, shape index: {}]   ;;  %s297_s3 = inlined_call_operand.hbm [shape: f32[8,5], index: 3, kind: output, shape index: {}]  }
   0x1   :  { %9 = vsyncpa [#allocation6], 0 }
   0x2   :  { %10 = vsyncpa [#allocation4], 0  ;;  %s230_s12 = smov [#allocation2]   ;;  %s231_s14 = smov [#allocation5]  }
   0x3   :  { %s17_s13 = sshll.u32 %s230_s12, 4  ;;  %s27_s15 = sshll.u32 %s231_s14, 4  ;;  %s18_s13 = int_to_ptr.vmem [resolvable:$true] %s17_s13  ;;  %s28_s15 = int_to_ptr.vmem [resolvable:$true] %s27_s15 }
   0x4   :  { %s158_s18 = scalar_lea.hbm %s294_s0, 128 }
   0x5   :  { %p159_p0 = scmp.ne.s32.totalorder %s294_s0, %s158_s18  ;;  %p162_p1 = scmp.lt.u32.totalorder %s158_s18, %s294_s0 }
   0x7   :  { %p164_p2 = pnand %p162_p1, %p159_p0 }
   0x9   :  { %167 = shalt.err (!%p164_p2)
}
   0xa   :  { %s168_s23 = scalar_lea.vmem %s18_s13, 128  ;;  %p173_p4 = scmp.lt.s32.totalorder %s18_s13, %s18_s13 }
   0xb   :  { %p169_p3 = scmp.ne.s32.totalorder %s18_s13, %s168_s23  ;;  %p174_p5 = scmp.lt.s32.totalorder %s168_s23, %s168_s23 }
   0xd   :  { %p175_p6 = por %p174_p5, %p173_p4 }
   0xf   :  { %p176_p7 = pnand %p175_p6, %p169_p3 }
  0x11   :  { %179 = shalt.err (!%p176_p7)
}
  0x12   :  { %20 = dma.hbm_to_vmem [thread:$0]  %s294_s0, 128, %s18_s13, [#allocation3]  }
  0x13   :  { %s180_s28 = scalar_lea.hbm %s295_s1, 128 }
  0x14   :  { %p181_p8 = scmp.ne.s32.totalorder %s295_s1, %s180_s28  ;;  %p184_p9 = scmp.lt.u32.totalorder %s180_s28, %s295_s1 }
  0x16   :  { %p186_p10 = pnand %p184_p9, %p181_p8 }
  0x18   :  { %189 = shalt.err (!%p186_p10)
}
  0x19   :  { %s190_s6 = scalar_lea.vmem %s28_s15, 128  ;;  %p195_p12 = scmp.lt.s32.totalorder %s28_s15, %s28_s15 }
  0x1a   :  { %p191_p11 = scmp.ne.s32.totalorder %s28_s15, %s190_s6  ;;  %p196_p13 = scmp.lt.s32.totalorder %s190_s6, %s190_s6 }
  0x1c   :  { %p197_p0 = por %p196_p13, %p195_p12 }
  0x1e   :  { %p198_p1 = pnand %p197_p0, %p191_p11 }
  0x20   :  { %201 = shalt.err (!%p198_p1)
}
  0x21   :  { %30 = dma.hbm_to_vmem [thread:$0]  %s295_s1, 128, %s28_s15, [#allocation6]  }
  0x22   :  { %224 = dma.done.wait [#allocation3], 128  }
  0x23   :  { %225 = vsyncadd [#allocation3], 4294967168 }
  0x24   :  { %226 = dma.done.wait [#allocation6], 128  }
  0x25   :  { %227 = vsyncadd [#allocation6], 4294967168  ;;  %v232_v0 = vmov 0.0   ;;  %vm233_vm0 = vmmov 0   ;;  %vm48_vm1 = vcmask 80896   ;;  %v39_v2 = vld [vmem:[#allocation2] sm:$0xff] }
  0x26   :  { %148 = vmatprep.subr.mxu0 %v232_v0  ;;  %150 = vmatprep.mubr.msk.f32.mxu0 %vm233_vm0, %v232_v0  ;;  %v40_v1 = vld [vmem:[#allocation5] sm:$0x1f]  ;;  %v143_v3 = vld [vmem:[%s296_s2] ss:$0 sm:$0xff]  ;;  %s234_s10 = smov [#allocation7]   ;;  %vm125_vm2 = vcmask 39936  }
  0x27   :  { %149 = vmatpush3.xpose.msk.msra.mxu0 %vm48_vm1, %v40_v1  ;;  %s133_s11 = sshll.u32 %s234_s10, 4  ;;  %s134_s11 = int_to_ptr.vmem [resolvable:$true] %s133_s11 }
  0x28   :  { %s202_s1 = scalar_lea.vmem %s134_s11, 128  ;;  %p207_p3 = scmp.lt.s32.totalorder %s134_s11, %s134_s11 }
  0x29   :  { %p203_p2 = scmp.ne.s32.totalorder %s134_s11, %s202_s1  ;;  %p208_p4 = scmp.lt.s32.totalorder %s202_s1, %s202_s1 }
  0x2a   :  { %151 = vmatmul.mubr.msk.f32.vlgmr.msra.gmra.mrb[0].mxu0 %vm48_vm1, %v39_v2 }
  0x2b   :  { %p209_p5 = por %p208_p4, %p207_p3 }
  0x2d   :  { %p210_p6 = pnand %p209_p5, %p203_p2 }
  0xfd   :  { %v121_v4 = vpop.f32.mrb[0].mxu0 }
  0xfe   :  { %v122_v5 = vadd.f32 %v143_v3, %v121_v4  ;;  %v152_v6 = vpop.f32.mrb[1].mxu0 }
 0x100   :  { %126 = vst.msk [vmem:[#allocation7] sm:$0xff] %vm125_vm2, %v122_v5 }
 0x101   :  { %213 = shalt.err (!%p210_p6)
}
 0x102   :  { %s214_s14 = scalar_lea.hbm %s297_s3, 128 }
 0x103   :  { %p215_p7 = scmp.ne.s32.totalorder %s297_s3, %s214_s14  ;;  %p218_p8 = scmp.lt.u32.totalorder %s214_s14, %s297_s3 }
 0x105   :  { %p220_p9 = pnand %p218_p8, %p215_p7 }
 0x107   :  { %223 = shalt.err (!%p220_p9)
}
 0x108   :  { %136 = dma.vmem_to_hbm [thread:$0]  %s134_s11, 128, %s297_s3, [#allocation4]  }
 0x109   :  { %228 = dma.done.wait [#allocation4], 128  }
 0x10a   :  { %229 = vsyncadd [#allocation4], 4294967168 }
 0x10b   :  { %140 = vsyncpa [#allocation3], 1 }
 0x10c   :  { %141 = vsyncpa [#allocation6], 1 }
 0x10d   :  { %142 = vsyncpa [#allocation4], 1 }

</bundles_post_ra>
